<compile_context>
chip_gen: v7x
topology: tpu7x:2x2x1
jax: 0.10.0
libtpu: 0.0.40
codegen_flags: <defaults>
</compile_context>

<pallas_src>
import math

import jax
import jax.numpy as jnp
from jax.experimental import pallas as pl
from jax.experimental.pallas import tpu as pltpu


def _pe_kernel(slope_ref, offset_ref, o_ref, tbl_ref):
    # grid = (batch_split, num_row_tiles, batch_per_split)
    # batch_per_split is innermost ("arbitrary") and carries the scratch table.
    s = pl.program_id(1)
    b = pl.program_id(2)

    @pl.when(b == 0)
    def _():
        rows, lanes = tbl_ref.shape
        # absolute grouped-row index of every row in this seq tile
        row = jax.lax.broadcasted_iota(jnp.int32, (rows, lanes), 0) + s * rows
        # theta = pos * inv_freq + phase, folded into per-lane slope/offset
        theta = row.astype(jnp.float32) * slope_ref[...] + offset_ref[...]
        tbl_ref[...] = jnp.sin(theta)

    # Per-batch step: pure VMEM -> HBM writeback of the cached table tile.
    o_ref[...] = tbl_ref[...]


def _build_table(d_model, seq_length):
    """Pure-JAX sinusoidal table (used for the tiny-shape fast path)."""
    half = d_model // 2
    pos = jnp.arange(seq_length, dtype=jnp.float32)[:, None]          # (S, 1)
    i = jnp.arange(half, dtype=jnp.float32)[None, :]                   # (1, D/2)
    inv_freq = jnp.exp(-(2.0 * i / jnp.float32(d_model))
                       * jnp.float32(math.log(10000.0)))
    theta = pos * inv_freq                                             # (S, D/2)
    pe = jnp.zeros((seq_length, d_model), jnp.float32)
    pe = pe.at[:, 0:2 * half:2].set(jnp.sin(theta))
    pe = pe.at[:, 1:2 * half:2].set(jnp.cos(theta))
    return pe


def positional_encoding_forward(x, d_model, seq_length, *, force_kernel=False):
    """Mirror of PositionalEncoding.forward(x) -> (batch, seq_length, d_model) f32."""
    batch_size = x.shape[0]

    # ---- tiny-shape fast path: kernel launch overhead would dominate --------
    out_bytes = batch_size * seq_length * d_model * 4
    if out_bytes < (512 * 1024) and not force_kernel:
        pe = _build_table(d_model, seq_length)
        return jnp.broadcast_to(pe[None], (batch_size, seq_length, d_model))

    # ---- lane-dense layout: pack `group` positions per lane row -------------
    # group = smallest count such that d_model*group is a multiple of 128.
    g = math.gcd(d_model, 128)
    group = 128 // g
    lane = d_model * group
    if lane > 32768:                      # pathological d_model -> masked stores
        group, lane = 1, d_model
    seq_padded = pl.cdiv(seq_length, group) * group   # pad; slice off later
    s_rows = seq_padded // group

    # ---- per-lane slope / offset (hoists exp and the sin/cos select) --------
    dim = jnp.arange(d_model)
    i = (dim // 2).astype(jnp.float32)
    inv_freq = jnp.exp(-(2.0 * i / jnp.float32(d_model))
                       * jnp.float32(math.log(10000.0)))
    phase = jnp.where(dim % 2 == 1, jnp.float32(math.pi / 2.0), jnp.float32(0.0))
    # odd d_model: this module never writes the last column -> keep it at 0
    valid = dim < 2 * (d_model // 2)
    inv_freq = jnp.where(valid, inv_freq, 0.0).astype(jnp.float32)
    phase = jnp.where(valid, phase, 0.0).astype(jnp.float32)

    inv_t = jnp.tile(inv_freq, group)                                  # (lane,)
    # pos = grouped_row * group + (l // d_model)
    slope = (jnp.float32(group) * inv_t).reshape(1, lane)
    offset = (jnp.repeat(jnp.arange(group, dtype=jnp.float32), d_model) * inv_t
              + jnp.tile(phase, group)).reshape(1, lane)

    # ---- seq tiling: ~8 MiB output tiles, rows multiple of 8 ----------------
    # VMEM budget: 2xT (pipelined out window) + T (scratch) ~ 24 MiB < 32 MiB.
    target_bytes = 8 * 1024 * 1024
    max_rows = max(8, target_bytes // (lane * 4))
    if s_rows <= max_rows:
        ts_rows = s_rows                  # full dim -> no (8,) sublane constraint
    else:
        ts_rows = max(8, (max_rows // 8) * 8)
    num_row_tiles = pl.cdiv(s_rows, ts_rows)

    # ---- megacore: leading batch-split axis so both TCs have parallel work --
    bsplit = 2 if (batch_size % 2 == 0 and batch_size >= 2) else 1
    bps = batch_size // bsplit

    out = pl.pallas_call(
        _pe_kernel,
        out_shape=jax.ShapeDtypeStruct((batch_size, s_rows, lane), jnp.float32),
        grid_spec=pltpu.PrefetchScalarGridSpec(
            num_scalar_prefetch=0,
            grid=(bsplit, num_row_tiles, bps),
            in_specs=[
                pl.BlockSpec((1, lane), lambda p, s, b: (0, 0)),   # slope
                pl.BlockSpec((1, lane), lambda p, s, b: (0, 0)),   # offset
            ],
            out_specs=pl.BlockSpec(
                (None, ts_rows, lane),
                lambda p, s, b, bps=bps: (p * bps + b, s, 0)),
            scratch_shapes=[pltpu.VMEM((ts_rows, lane), jnp.float32)],
        ),
        compiler_params=pltpu.CompilerParams(
            # batch-split & seq tiles are independent (megacore-shardable);
            # inner batch axis carries the scratch table -> arbitrary.
            dimension_semantics=("parallel", "parallel", "arbitrary"),
            # 3 x 8 MiB tiles + headroom; raises v5e's 16 MiB scoped default,
            # within v7x's 64 MiB physical VMEM.
            vmem_limit_bytes=32 * 1024 * 1024,
        ),
    )(slope, offset)

    # trailing-dim reshape (contiguous) back to the PyTorch layout; drop padding
    out = out.reshape(batch_size, seq_padded, d_model)
    if seq_padded != seq_length:
        out = out[:, :seq_length, :]
    return out


def _reference(batch_size, d_model, seq_length):
    """Pure-JAX reference matching the PyTorch double loop (even d_model)."""
    pos = jnp.arange(seq_length, dtype=jnp.float32)[:, None]          # (S, 1)
    i = jnp.arange(d_model // 2, dtype=jnp.float32)[None, :]          # (1, D/2)
    theta = pos / jnp.power(10000.0, 2.0 * i / d_model)               # (S, D/2)
    pe = jnp.zeros((seq_length, d_model), jnp.float32)
    pe = pe.at[:, 0::2].set(jnp.sin(theta))
    pe = pe.at[:, 1::2].set(jnp.cos(theta))
    return jnp.broadcast_to(pe[None], (batch_size, seq_length, d_model))


if __name__ == "__main__":
    # Small shapes consistent with the module's forward: x is 2-D (batch, feat).
    batch_size = 2
    vocab_size = 100   # unused by forward (kept for parity with __init__)
    d_model = 32
    seq_length = 8

    key = jax.random.PRNGKey(0)
    # x's values are ignored by forward; only its batch dim matters.
    x = jax.random.randint(key, (batch_size, seq_length), 0, vocab_size,
                           dtype=jnp.int32)

    # 1) Pallas kernel path (force past the tiny-shape fast path).
    out = positional_encoding_forward(x, d_model=d_model, seq_length=seq_length,
                                      force_kernel=True)
    out = jax.block_until_ready(out)
    ref = _reference(batch_size, d_model, seq_length)
    assert out.shape == (batch_size, seq_length, d_model)
    assert out.dtype == jnp.float32
    assert jnp.allclose(out, ref, atol=2e-5, rtol=1e-5), "mismatch vs reference"

    # 2) Padded-seq path: seq_length not a multiple of the lane-pack group (4).
    seq2 = 10
    x2 = jax.random.randint(key, (batch_size, seq2), 0, vocab_size,
                            dtype=jnp.int32)
    out2 = jax.block_until_ready(
        positional_encoding_forward(x2, d_model=d_model, seq_length=seq2,
                                    force_kernel=True))
    ref2 = _reference(batch_size, d_model, seq2)
    assert out2.shape == (batch_size, seq2, d_model)
    assert jnp.allclose(out2, ref2, atol=2e-5, rtol=1e-5), "padded-seq mismatch"

    # 3) Tiny-shape fast path (pure-JAX broadcast) must agree too.
    out3 = jax.block_until_ready(
        positional_encoding_forward(x, d_model=d_model, seq_length=seq_length))
    assert jnp.allclose(out3, ref, atol=2e-5, rtol=1e-5), "fast-path mismatch"

    print("KERNEL_OK")
</pallas_src>

<mosaic_0001>
module attributes {stable_mosaic.version = 11 : i64} {
  func.func @_pe_kernel(%arg0: i32, %arg1: i32, %arg2: i32, %arg3: memref<1x128xf32, #tpu.memory_space<vmem>>, %arg4: memref<1x128xf32, #tpu.memory_space<vmem>>, %arg5: memref<1x2x128xf32, #tpu.memory_space<vmem>>, %arg6: memref<2x128xf32, #tpu.memory_space<vmem>>) attributes {dimension_semantics = [#tpu.dimension_semantics<parallel>, #tpu.dimension_semantics<parallel>, #tpu.dimension_semantics<arbitrary>], iteration_bounds = array<i64: 2, 1, 1>, scalar_prefetch = 0 : i64, scratch_operands = 1 : i64, tpu.core_type = #tpu.core_type<tc>, window_params = [{pipeline_mode = #tpu.pipeline_mode<synchronous>, transform_indices = @transform_0, window_bounds = array<i64: 1, 128>}, {pipeline_mode = #tpu.pipeline_mode<synchronous>, transform_indices = @transform_1, window_bounds = array<i64: 1, 128>}, {transform_indices = @transform_2, window_bounds = array<i64: 1, 2, 128>}]} {
    %c0_i32 = arith.constant 0 : i32
    %0 = arith.cmpi eq, %arg2, %c0_i32 : i32
    %1 = arith.extui %0 : i1 to i32
    %c0_i32_0 = arith.constant 0 : i32
    %2 = arith.cmpi ne, %1, %c0_i32_0 : i32
    scf.if %2 {
      %7 = tpu.iota {dimensions = array<i32: 0>} : vector<2x128xi32>
      %c2_i32 = arith.constant 2 : i32
      %8 = arith.muli %arg1, %c2_i32 : i32
      %9 = vector.broadcast %8 : i32 to vector<2x128xi32>
      %10 = arith.addi %7, %9 : vector<2x128xi32>
      %11 = arith.sitofp %10 : vector<2x128xi32> to vector<2x128xf32>
      %c0_5 = arith.constant 0 : index
      %c0_6 = arith.constant 0 : index
      %12 = vector.load %arg3[%c0_5, %c0_6] : memref<1x128xf32, #tpu.memory_space<vmem>>, vector<1x128xf32>
      %13 = vector.broadcast %12 : vector<1x128xf32> to vector<2x128xf32>
      %14 = arith.mulf %11, %13 : vector<2x128xf32>
      %c0_7 = arith.constant 0 : index
      %c0_8 = arith.constant 0 : index
      %15 = vector.load %arg4[%c0_7, %c0_8] : memref<1x128xf32, #tpu.memory_space<vmem>>, vector<1x128xf32>
      %16 = vector.broadcast %15 : vector<1x128xf32> to vector<2x128xf32>
      %17 = arith.addf %14, %16 : vector<2x128xf32>
      %18 = math.sin %17 : vector<2x128xf32>
      %c0_9 = arith.constant 0 : index
      %c0_10 = arith.constant 0 : index
      %19 = vector.load %arg6[%c0_9, %c0_10] : memref<2x128xf32, #tpu.memory_space<vmem>>, vector<2x128xf32>
      tpu.vector_store %arg6[%c0_9, %c0_10], %18 {strides = array<i32>} : memref<2x128xf32, #tpu.memory_space<vmem>>, vector<2x128xf32>,
    } else {
    }
    %c0 = arith.constant 0 : index
    %c0_1 = arith.constant 0 : index
    %3 = vector.load %arg6[%c0, %c0_1] : memref<2x128xf32, #tpu.memory_space<vmem>>, vector<2x128xf32>
    %c0_2 = arith.constant 0 : index
    %c0_3 = arith.constant 0 : index
    %c0_4 = arith.constant 0 : index
    %4 = vector.load %arg5[%c0_2, %c0_3, %c0_4] : memref<1x2x128xf32, #tpu.memory_space<vmem>>, vector<1x2x128xf32>
    %5 = vector.shape_cast %4 : vector<1x2x128xf32> to vector<2x128xf32>
    %6 = vector.shape_cast %3 : vector<2x128xf32> to vector<1x2x128xf32>
    tpu.vector_store %arg5[%c0_2, %c0_3, %c0_4], %6 {strides = array<i32>} : memref<1x2x128xf32, #tpu.memory_space<vmem>>, vector<1x2x128xf32>,
    return
  }
  func.func @transform_0(%arg0: i32, %arg1: i32, %arg2: i32) -> (i32, i32) {
    %c0_i32 = arith.constant 0 : i32
    %c0_i32_0 = arith.constant 0 : i32
    %c0_i32_1 = arith.constant 0 : i32
    return %c0_i32, %c0_i32_0 : i32, i32
  }
  func.func @transform_1(%arg0: i32, %arg1: i32, %arg2: i32) -> (i32, i32) {
    %c0_i32 = arith.constant 0 : i32
    %c0_i32_0 = arith.constant 0 : i32
    %c0_i32_1 = arith.constant 0 : i32
    return %c0_i32, %c0_i32_0 : i32, i32
  }
  func.func @transform_2(%arg0: i32, %arg1: i32, %arg2: i32) -> (i32, i32, i32) {
    %c1_i32 = arith.constant 1 : i32
    %0 = arith.muli %arg0, %c1_i32 : i32
    %1 = arith.addi %0, %arg2 : i32
    %c0_i32 = arith.constant 0 : i32
    %c0_i32_0 = arith.constant 0 : i32
    return %1, %arg1, %c0_i32 : i32, i32, i32
  }
}

</mosaic_0001>

<bundles_post_ra>
// kernel: tpu_custom_call.1
= control target key start
LH: loop header
LB: loop body
LE: loop exit
PB: predicated region body
PF: predicated region fallthrough
CT: control target
= control target key end

     0   :  { %7 = vsyncpa [#allocation4], 0  ;;  %s781_s0 = inlined_call_operand.hbm [shape: f32[1,128], index: 0, kind: input, shape index: {}]   ;;  %s782_s1 = inlined_call_operand.vmem [shape: f32[1,128], index: 1, kind: input, shape index: {}]   ;;  %s783_s2 = inlined_call_operand.hbm [shape: f32[2,2,128], index: 2, kind: output, shape index: {}]  }
   0x1   :  { %8 = vsyncpa [#allocation5], 0 }
   0x2   :  { %10 = vsyncpa [#allocation5 + $0x1], 0  ;;  %s612_s9 = smov 0   ;;  %s614_s10 = smov 0  }
   0x3   :  { %s616_s11 = smov 0   ;;  %s618_s12 = smov 0  }
   0x4   :  { %s620_s13 = smov 0   ;;  %s622_s14 = smov 0  }
   0x5 LB: > { %s380_s15 = sadd.s32 4294967295, %s587_s14   ;;  %s381_s16 = sadd.s32 4294967294, %s587_s14   ;;  %s587_s14 = sphi %s622_s14, %s16_s14   ;;  %s583_s13 = sphi %s620_s13, %s801_s13   ;;  %s579_s12 = sphi %s618_s12, %s800_s12   ;;  %s575_s11 = sphi %s616_s11, %s799_s11   ;;  %s571_s10 = sphi %s614_s10, %s798_s10   ;;  %s567_s9 = sphi %s612_s9, %s797_s9  }
   0x6   : > { %s35_s17 = sadd.s32 1, %s583_s13  ;;  %s88_s18 = sadd.s32 1, %s575_s11 }
   0x7   : > { %p37_p0 = scmp.ge.s32.totalorder %s35_s17, 2  ;;  %p98_p1 = scmp.ne.s32.totalorder %s575_s11, %s571_s10 }
   0x8   : > { %p99_p2 = scmp.eq.s32.totalorder %s380_s15, 1  ;;  %p104_p3 = scmp.ne.s32.totalorder %s571_s10, %s567_s9 }
   0x9   : > { %s803_s17 = smov (%p37_p0, %s35_s17), 0  ;;  %p105_p5 = scmp.eq.s32.totalorder %s381_s16, 1 }
   0xa   : > { %p652_p4 = por %p99_p2, %p98_p1  ;;  %s83_s20 = ssub.s32 %s583_s13, %s803_s17 }
   0xb   : > { %p382_p6 = scmp.ge.s32.totalorder %s587_s14, 1  ;;  %p86_p7 = scmp.eq.s32.totalorder %s83_s20, 0 }
   0xc   : > { %s788_s19 = scalar_select %p652_p4, 1, 0 }
   0xd   : > { %p659_p8 = por %p105_p5, %p104_p3  ;;  %p112_p9 = scmp.lt.s32.totalorder %s587_s14, 3 }
   0xe   : > { %s665_s22 = scalar_select %p86_p7, %s575_s11, %s88_s18  }
   0xf   : > { %s789_s21 = scalar_select %p659_p8, 1, 0 }
  0x10   : > { %p667_p10 = pnand %p382_p6, %p112_p9  ;;  %p671_p11 = scmp.eq.s32.totalorder %s380_s15, 0 }
  0x11   : > { %s589_s25 = smov [#allocation3]   ;;  %s477_s30 = scalar_lea.hbm %s781_s0, 16 }
  0x12   : > { %s790_s23 = scalar_select %p667_p10, 1, 0 }
  0x13   : > { %s791_s24 = scalar_select %p671_p11, 1, 0 }
  0x14   : > { %p407_p12 = pneg %p667_p10  ;;  %s125_s26 = sshll.u32 %s589_s25, 4  ;;  %s126_s26 = int_to_ptr.vmem [resolvable:$true] %s125_s26 }
  0x15   : > { %p478_p0 = scmp.ne.s32.totalorder %s781_s0, %s477_s30  ;;  %p484_p5 = scmp.lt.u32.totalorder %s477_s30, %s781_s0 }
  0x16   : > { %p679_p13 = pnand %p671_p11, %p407_p12 }
  0x18   : > { %p479_p1 = pneg %p679_p13 }
  0x1a   : > { %p480_p2 = pnand %p479_p1, %p478_p0 }
  0x1c   : > { %p481_p3 = pneg %p480_p2 }
  0x1e   : > { %p486_p6 = pnand %p484_p5, %p481_p3 }
  0x20   : > { %489 = shalt.err (!%p486_p6)
}
  0x21   : > { %s490_s7 = scalar_lea.vmem %s126_s26, 16  ;;  %s497_s8 = scalar_lea.vmem %s126_s26, 32 }
  0x22   : > { %p491_p7 = scmp.ne.s32.totalorder %s126_s26, %s490_s7  ;;  %p498_p8 = scmp.lt.s32.totalorder %s126_s26, %s126_s26 }
  0x23   : > { %p499_p4 = scmp.lt.s32.totalorder %s497_s8, %s490_s7 }
  0x24   : > { %p493_p9 = pnand %p491_p7, %p479_p1 }
  0x25   : > { %p500_p11 = por %p499_p4, %p498_p8 }
  0x26   : > { %p494_p12 = pneg %p493_p9 }
  0x28   : > { %p501_p10 = pnand %p500_p11, %p494_p12 }
  0x2a   : > { %504 = shalt.err (!%p501_p10)
}
  0x2b   : > { %410 = dma.hbm_to_vmem [thread:$0]  (!%p679_p13), %s781_s0, 16, %s126_s26, [#allocation4]  }
  0x2c   : > { %p793_p0 = scmp.ne.s32.totalorder %s790_s23, 0 }
  0x2d   : > { %p794_p2 = scmp.ne.s32.totalorder (!%p793_p0), %s791_s24, 0 }
  0x2e   : > { %141 = sbr.rel (%p793_p0) target bundleno = 166 (0xa6), region = 28 }
  0x35   : > { %558 = dma.done.wait (%p794_p2), [#allocation4], 16  }
  0x36   : > { %560 = vsyncadd (%p794_p2), [#allocation4], 4294967280  ;;  %v163_v0 = vlaneseq  ;;  %v387_v3 = vld [vmem:[#allocation3] ss:$0 sm:$0xff]  ;;  %v388_v4 = vld [vmem:[%s782_s1] ss:$0 sm:$0xff] }
  0x37   : > { %v590_v18 = vmov 683565275   ;;  %v591_v20 = vmov 2475754826   ;;  %v592_v22 = vmov 2131351028  }
  0x38   : > { %v164_v1 = vshrl.u32 %v163_v0, 7  ;;  %v593_v24 = vmov 2102212464   ;;  %v594_v26 = vmov 920167782   ;;  %s155_s23 = sand.u32 1, %s571_s10  }
  0x39   : > { %v595_v33 = vmov 1326507024   ;;  %s386_s24 = sshll.u32 %s155_s23, 1  ;;  %s394_s27 = sshll.u32 %s579_s12, 5 }
  0x3a   : > { %v168_v2 = vcvt.s32.f32 %v164_v1  ;;  %s157_s25 = scalar_lea.vmem [#allocation6], %s386_s24  ;;  %s736_s30 = scalar_lea.hbm %s783_s2, %s394_s27 }
  0x3b   : > { %s308_s26 = sshll.u32 %s157_s25, 4  ;;  %s293_s3 = scalar_lea.sflag [#allocation5], %s155_s23  ;;  %s731_s26 = int_to_ptr.vmem [resolvable:$true] %s308_s26 }
  0x3c   : > { %v176_v5 = vmul.f32 %v387_v3, %v168_v2  ;;  %s505_s4 = scalar_lea.vmem %s731_s26, 32  ;;  %p795_p8 = scmp.ne.s32.totalorder %s788_s19, 0 }
  0x3d   : > { %p506_p4 = scmp.ne.s32.totalorder %s731_s26, %s505_s4  ;;  %s596_s5 = smov [#allocation6]  }
  0x3e   : > { %v708_v6 = vadd.f32 %v388_v4, %v176_v5  ;;  %s509_s12 = sshll.u32 %s596_s5, 4  ;;  %s510_s12 = int_to_ptr.vmem [resolvable:$false] %s509_s12 }
  0x3f   : > { %p507_p10 = pnand %p506_p4, %p795_p8  ;;  %s511_s6 = scalar_lea.vmem %s510_s12, 64 }
  0x40   : > { %v188_v7 = vand.u32 2139095040, %v708_v6  ;;  %v185_v9 = vand.u32 2147483647, %v708_v6  ;;  %vm187_vm7 = vcmp.lt.s32.totalorder %v708_v6, 0  ;;  %vm277_vm12 = vweird.f32 %v708_v6  ;;  %p512_p13 = scmp.lt.s32.totalorder %s731_s26, %s510_s12  ;;  %p513_p1 = scmp.lt.s32.totalorder %s511_s6, %s505_s4 }
  0x41   : > { %p508_p11 = pneg %p507_p10 }
  0x42   : > { %v189_v8 = vshrl.u32 %v188_v7, 23  ;;  %v192_v12 = vand.u32 8388607, %v185_v9  ;;  %vm186_vm8 = vcmp.le.f32.partialorder %v185_v9, 0.7853982  ;;  %p514_p3 = por %p513_p1, %p512_p13 }
  0x44   : > { %v389_v10 = vadd.s32 4294967169, %v189_v8  ;;  %v193_v15 = vor.u32 8388608, %v192_v12  ;;  %p515_p5 = pnand %p514_p3, %p508_p11 }
  0x46   : > { %v195_v11 = vadd.s32 1, %v389_v10  ;;  %v233_v35 = vshll.u32 %v193_v15, 8 }
  0x48   : > { %vm196_vm0 = vcmp.gt.s32.totalorder %v195_v11, 0 }
  0x49   : > { %v197_v13 = vsel %vm196_vm0, %v195_v11, 0 }
  0x4a   : > { %v199_v14 = vand.u32 31, %v197_v13  ;;  %v198_v16 = vshrl.u32 %v197_v13, 5 }
  0x4c   : > { %v200_v17 = vsub.s32 32, %v199_v14  ;;  %v202_v19 = vshll.u32 %v590_v18, %v199_v14  ;;  %v205_v21 = vshll.u32 %v591_v20, %v199_v14  ;;  %v208_v23 = vshll.u32 %v592_v22, %v199_v14 }
  0x4d   : > { %v211_v25 = vshll.u32 %v593_v24, %v199_v14  ;;  %v214_v27 = vshll.u32 %v594_v26, %v199_v14  ;;  %vm217_vm1 = vcmp.lt.s32.totalorder %v198_v16, 1  ;;  %vm220_vm2 = vcmp.lt.s32.totalorder %v198_v16, 4 }
  0x4e   : > { %v201_v28 = vshrl.u32 %v590_v18, %v200_v17  ;;  %v203_v29 = vshrl.u32 %v591_v20, %v200_v17  ;;  %v206_v30 = vshrl.u32 %v592_v22, %v200_v17  ;;  %v209_v31 = vshrl.u32 %v593_v24, %v200_v17 }
  0x4f   : > { %v212_v32 = vshrl.u32 %v594_v26, %v200_v17  ;;  %v215_v34 = vshrl.u32 %v595_v33, %v200_v17  ;;  %vm218_vm3 = vcmp.lt.s32.totalorder %v198_v16, 2  ;;  %vm219_vm4 = vcmp.lt.s32.totalorder %v198_v16, 3 }
  0x50   : > { %v204_v36 = vor.u32 %v203_v29, %v202_v19  ;;  %v207_v37 = vor.u32 %v206_v30, %v205_v21  ;;  %v210_v38 = vor.u32 %v209_v31, %v208_v23 }
  0x51   : > { %v213_v39 = vor.u32 %v212_v32, %v211_v25  ;;  %v216_v40 = vor.u32 %v215_v34, %v214_v27 }
  0x52   : > { %v221_v41 = vsel %vm217_vm1, %v201_v28, %v204_v36  ;;  %v222_v42 = vsel %vm220_vm2, %v210_v38, 2102212464  ;;  %v225_v43 = vsel %vm217_vm1, %v204_v36, %v207_v37  ;;  %v229_v44 = vsel %vm217_vm1, %v207_v37, %v210_v38 }
  0x53   : > { %v223_v45 = vsel %vm219_vm4, %v207_v37, %v222_v42  ;;  %v226_v46 = vsel %vm220_vm2, %v213_v39, 920167782  ;;  %v230_v47 = vsel %vm220_vm2, %v216_v40, 1326507024 }
  0x54   : > { %v227_v48 = vsel %vm219_vm4, %v210_v38, %v226_v46  ;;  %v231_v49 = vsel %vm219_vm4, %v213_v39, %v230_v47  ;;  %v224_v50 = vsel %vm218_vm3, %v221_v41, %v223_v45 }
  0x55   : > { %v228_v51 = vsel %vm218_vm3, %v225_v43, %v227_v48  ;;  %v232_v52 = vsel %vm218_vm3, %v229_v44, %v231_v49  ;;  %v240_v57 = vmul.u32 %v233_v35, %v224_v50 }
  0x56   : > { %v714_v53 = vmul.u32.u64.low %v233_v35, %v232_v52  ;;  %v715_v54 = vmul.u32.u64.high %v233_v35, %v232_v52, %v714_v53  ;;  %v717_v55 = vmul.u32.u64.low %v233_v35, %v228_v51  ;;  %v718_v56 = vmul.u32.u64.high %v233_v35, %v228_v51, %v717_v55 }
  0x58   : > { %vm242_vm5 = vc.u32 %v715_v54, %v717_v55  ;;  %v243_v58 = vadd.s32 1, %v718_v56  ;;  %v241_v5 = vadd.s32 %v717_v55, %v715_v54 }
  0x5a   : > { %v244_v59 = vsel %vm242_vm5, %v243_v58, %v718_v56 }
  0x5b   : > { %v245_v60 = vadd.s32 %v244_v59, %v240_v57 }
  0x5d   : > { %v246_v61 = vadd.s32 536870912, %v245_v60 }
  0x5f   : > { %v247_v62 = vshrl.u32 %v246_v61, 30 }
  0x61   : > { %v248_v63 = vshll.u32 %v247_v62, 30  ;;  %v271_v19 = vsub.s32 4, %v247_v62 }
  0x63   : > { %v249_v0 = vsub.s32 %v245_v60, %v248_v63  ;;  %v272_v22 = vsel %vm187_vm7, %v271_v19, %v247_v62 }
  0x64   : > { %v274_v25 = vsel %vm186_vm8, 0, %v272_v22 }
  0x65   : > { %v251_v1 = vsub.s32 0, %v249_v0  ;;  %v278_v26 = vadd.s32 3, %v274_v25 }
  0x67   : > { %v390_v2 = vmin.u32 %v251_v1, %v249_v0  ;;  %v279_v27 = vand.u32 3, %v278_v26 }
  0x69   : > { %v253_v3 = vclz %v390_v2  ;;  %vm284_vm9 = vcmp.eq.s32.totalorder %v279_v27, 2  ;;  %vm281_vm10 = vcmp.eq.s32.totalorder %v279_v27, 0  ;;  %vm280_vm11 = vcmp.lt.s32.totalorder %v279_v27, 2 }
  0x6b   : > { %v391_v4 = vadd.s32 4294967294, %v253_v3 }
  0x6d   : > { %vm392_vm6 = vcmp.lt.s32.totalorder %v391_v4, 0 }
  0x6e   : > { %v256_v7 = vsel %vm392_vm6, 0, %v391_v4 }
  0x6f   : > { %v257_v8 = vsub.s32 32, %v256_v7  ;;  %v258_v10 = vshll.u32 %v249_v0, %v256_v7  ;;  %v261_v11 = vsub.s32 4294967266, %v256_v7 }
  0x71   : > { %v259_v12 = vshrl.u32 %v241_v5, %v257_v8  ;;  %v262_v13 = vadd.s32 127, %v261_v11 }
  0x73   : > { %v260_v14 = vor.u32 %v259_v12, %v258_v10  ;;  %v263_v15 = vshll.u32 %v262_v13, 23 }
  0x75   : > { %v264_v16 = vor.u32 4788187, %v263_v15  ;;  %v267_v17 = vcvt.s32.f32 %v260_v14 }
  0x77   : > { %v265_v18 = vand.u32 2147483647, %v264_v16 }
  0x79   : > { %v268_v20 = vmul.f32 %v267_v17, %v265_v18 }
  0x7b   : > { %v269_v21 = vxor.u32 2147483648, %v268_v20 }
  0x7d   : > { %v270_v23 = vsel %vm187_vm7, %v269_v21, %v268_v20 }
  0x7e   : > { %v273_v24 = vsel %vm186_vm8, %v708_v6, %v270_v23 }
  0x7f   : > { %473 = vcosq.f32 %v273_v24 }
  0x80   : > { %475 = vsinq.f32 %v273_v24 }
  0x89   : > { %v474_v28 = vpop.eup %473 }
  0x8a   : > { %v476_v29 = vpop.eup %475  ;;  %v285_v30 = vxor.u32 2147483648, %v474_v28 }
  0x8b   : > { %v282_v31 = vxor.u32 2147483648, %v476_v29 }
  0x8c   : > { %v286_v9 = vsel %vm284_vm9, %v285_v30, %v476_v29 }
  0x8d   : > { %v283_v32 = vsel %vm281_vm10, %v474_v28, %v282_v31 }
  0x8e   : > { %v287_v33 = vsel %vm280_vm11, %v283_v32, %v286_v9 }
  0x8f   : > { %v288_v34 = vsel %vm277_vm12, nan, %v287_v33 }
  0x90   : > { %289 = vst [vmem:[#allocation2] sm:$0x3] %v288_v34 }
  0x97   : > { %v290_v6 = vld [vmem:[#allocation2] sm:$0x3] }
  0x98   : > { %291 = vst [vmem:[%s157_s25] sm:$0x3] %v290_v6 }
  0x99   : > { %518 = shalt.err (!%p515_p5)
}
  0x9a   : > { %s519_s7 = scalar_lea.hbm %s736_s30, 32  ;;  %s523_s16 = scalar_lea.hbm %s783_s2, 64 }
  0x9b   : > { %p520_p6 = scmp.ne.s32.totalorder %s736_s30, %s519_s7  ;;  %p524_p12 = scmp.lt.u32.totalorder %s736_s30, %s783_s2 }
  0x9c   : > { %p525_p0 = scmp.lt.u32.totalorder %s523_s16, %s519_s7  ;;  %p527_p4 = scmp.lt.u32.totalorder %s519_s7, %s736_s30 }
  0x9d   : > { %p521_p7 = pnand %p520_p6, %p795_p8 }
  0x9e   : > { %p526_p2 = por %p525_p0, %p524_p12 }
  0x9f   : > { %p522_p9 = pneg %p521_p7 }
  0xa0   : > { %p528_p10 = por %p527_p4, %p526_p2 }
  0xa2   : > { %p529_p11 = pnand %p528_p10, %p522_p9 }
  0xa4   : > { %532 = shalt.err (!%p529_p11)
}
  0xa5   : > { %405 = dma.vmem_to_hbm [thread:$0]  (%p795_p8), %s731_s26, 32, %s736_s30, %s293_s3  }
  0xa6 PF: > { %p417_p13 = scmp.ge.s32.totalorder %s587_s14, 2  ;;  %s320_s23 = sand.u32 1, %s567_s9  }
  0xa7   : > { %p796_p1 = scmp.ne.s32.totalorder %s789_s21, 0  ;;  %s321_s24 = scalar_lea.sflag [#allocation5], %s320_s23 }
  0xa9   : > { %p412_p3 = pnand %p417_p13, %p796_p1 }
  0xab   : > { %562 = dma.done.wait (!%p412_p3), %s321_s24, 32  }
  0xac   : > { %564 = vsyncadd (!%p412_p3), %s321_s24, 4294967264  ;;  %s16_s14 = sadd.s32 1, %s587_s14   ;;  %s797_s9 = smov %s571_s10 }
  0xad   : > { %p13_p5 = scmp.ge.s32.totalorder %s16_s14, 4   ;;  %s798_s10 = smov %s575_s11 }
  0xae   : > { %s799_s11 = smov %s665_s22  ;;  %s800_s12 = smov %s583_s13 }
  0xaf   : > { %s801_s13 = smov %s803_s17  ;;  %15 = sbr.rel (!%p13_p5) target bundleno = 5 (0x5), region = 69 }
  0xb6   :  { %326 = vsyncpa [#allocation4], 1 }
  0xb7   :  { %328 = vsyncpa [#allocation4 + $0x1], 1 }
  0xb8   :  { %329 = vsyncpa [#allocation5], 1 }
  0xb9   :  { %331 = vsyncpa [#allocation5 + $0x1], 1 }

</bundles_post_ra>
